<compile_context>
chip_gen: v7x
topology: tpu7x:2x2x1
jax: 0.10.0
libtpu: 0.0.40
codegen_flags: <defaults>
</compile_context>

<pallas_src>
import functools

import jax
import jax.numpy as jnp
import numpy as np
from jax.experimental import pallas as pl
from jax.experimental.pallas import tpu as pltpu

_VMEM_LIMIT = 32 * 1024 * 1024


def _round_up(x, m):
    return ((x + m - 1) // m) * m


# ----------------------------------------------------------------------------
# Kernel 1: fused projection  y = x @ [W_l | W_r] + [b_l | b_r]
# ----------------------------------------------------------------------------
def _proj_kernel(x_ref, w_ref, b_ref, y_ref):
    y_ref[...] = (jnp.dot(x_ref[...], w_ref[...],
                          preferred_element_type=jnp.float32) + b_ref[...])


def _project(x, w_fused, b_fused, tile):
    n_pad, fin = x.shape
    two_hc = w_fused.shape[1]
    return pl.pallas_call(
        _proj_kernel,
        out_shape=jax.ShapeDtypeStruct((n_pad, two_hc), jnp.float32),
        grid_spec=pltpu.PrefetchScalarGridSpec(
            num_scalar_prefetch=0,
            grid=(n_pad // tile,),
            in_specs=[
                pl.BlockSpec((tile, fin), lambda i: (i, 0)),
                pl.BlockSpec((fin, two_hc), lambda i: (0, 0)),
                pl.BlockSpec((1, two_hc), lambda i: (0, 0)),
            ],
            out_specs=pl.BlockSpec((tile, two_hc), lambda i: (i, 0)),
        ),
        compiler_params=pltpu.CompilerParams(
            dimension_semantics=("parallel",),
            vmem_limit_bytes=_VMEM_LIMIT,
        ),
    )(x, w_fused, b_fused)


# ----------------------------------------------------------------------------
# Kernel 2: tiled GATv2 attention + aggregation (online masked softmax),
# transposed (lane-dense) layout, empty-tile skip via scalar prefetch.
# ----------------------------------------------------------------------------
def _gatv2_attn_kernel(nnz_ref, att_ref, axr_ref, axl_ref, xr_cm_ref,
                       xl_nm_ref, xl_cm_ref, adjt_ref, bias_ref,
                       out_ref, m_ref, l_ref, acc_ref, *,
                       heads, out_channels, apply_elu):
    i = pl.program_id(0)
    j = pl.program_id(1)

    @pl.when(j == 0)
    def _init():
        m_ref[...] = jnp.full(m_ref.shape, -1e30, jnp.float32)
        l_ref[...] = jnp.zeros(l_ref.shape, jnp.float32)
        acc_ref[...] = jnp.zeros(acc_ref.shape, jnp.float32)

    @pl.when(nnz_ref[i, j] > 0)          # skip tiles with no edges at all
    def _block():
        # Additive adjacency mask, built once per (i, j) tile:
        #   0 where there is an edge, -1e30 where there is none.
        mask_add = (adjt_ref[...].astype(jnp.float32) - 1.0) * 1e30   # (TJ, TI)

        for h in range(heads):
            hs = h * out_channels
            xr_h = xr_cm_ref[h]                                   # (C, TI)

            # e[j, i] = sum_c att[h,c] * leaky_relu(xl[j,h,c] + xr[i,h,c])
            #         = 0.6*(axl[j,h] + axr[h,i]) + sum_c (0.4*att[h,c])*|xl+xr|
            # (axl/axr are pre-scaled by 0.6, att_ref by 0.4 in the wrapper.)
            e = axl_ref[:, h:h + 1] + axr_ref[h:h + 1, :]         # (TJ, TI)
            for c in range(out_channels):
                z = xl_nm_ref[:, hs + c:hs + c + 1] + xr_h[c:c + 1, :]
                e = e + att_ref[h, c] * jnp.abs(z)                # SMEM scalar
            e = e + mask_add

            # Online softmax over source blocks (mask applied before the max).
            m_prev = m_ref[h:h + 1, :]                            # (1, TI)
            m_new = jnp.maximum(m_prev, jnp.max(e, axis=0, keepdims=True))
            scale = jnp.exp(m_prev - m_new)
            p = jnp.exp(e - m_new)                                # (TJ, TI)
            l_ref[h:h + 1, :] = (scale * l_ref[h:h + 1, :]
                                 + jnp.sum(p, axis=0, keepdims=True))
            acc_ref[hs:hs + out_channels, :] = (
                scale * acc_ref[hs:hs + out_channels, :]
                + jnp.dot(xl_cm_ref[h], p,
                          preferred_element_type=jnp.float32))    # (C, TI)
            m_ref[h:h + 1, :] = m_new

    @pl.when(j == pl.num_programs(1) - 1)
    def _finalize():
        for h in range(heads):
            hs = h * out_channels
            l_h = l_ref[h:h + 1, :]
            # guard rows with no incoming edges (padded rows) against 1/0;
            # exact reciprocal (finalize-only, negligible cost).
            inv_l = pl.reciprocal(jnp.where(l_h > 0.0, l_h, 1.0), approx=False)
            o = acc_ref[hs:hs + out_channels, :] * inv_l
            o = o + bias_ref[hs:hs + out_channels, :]
            if apply_elu:
                o = jnp.where(o > 0.0, o, jnp.exp(o) - 1.0)
            out_ref[hs:hs + out_channels, :] = o                  # lane-dense


def gatv2_layer(x_pad, adjt_pad, blk_nnz, params, *, heads, out_channels,
                apply_elu, tile):
    n_pad = x_pad.shape[0]
    hc = heads * out_channels
    nblk = n_pad // tile

    # Fused projection (single matmul for both lin_l and lin_r).
    w = jnp.concatenate([params["wl"], params["wr"]], axis=1)
    b = jnp.concatenate([params["bl"], params["br"]], axis=1)
    y = _project(x_pad, w, b, tile)                 # (n_pad, 2*hc)
    xl = y[:, :hc]                                  # source projection, node-major
    xr = y[:, hc:]                                  # target projection, node-major

    att = params["att"].astype(jnp.float32)         # (H, C)
    # Layout plumbing (tiny (N, hc) arrays, done once per layer in XLA):
    #   channel-major copies (nodes on lanes) + hoisted linear score terms.
    xr_cm = jnp.transpose(xr.reshape(n_pad, heads, out_channels), (1, 2, 0))
    xl_cm = jnp.transpose(xl.reshape(n_pad, heads, out_channels), (1, 2, 0))
    axr = 0.6 * jnp.einsum("hcn,hc->hn", xr_cm, att)              # (H, N)
    axl = 0.6 * jnp.einsum("hcn,hc->nh", xl_cm, att)              # (N, H)
    att04 = (0.4 * att)                                           # (H, C) -> SMEM
    bias_col = params["bias"].reshape(hc, 1).astype(jnp.float32)  # (hc, 1)

    # TODO(synk): xl is streamed in both node-major and channel-major form;
    # the kernel is VALU/EUP-bound so the extra HBM stream is not binding.
    kernel = functools.partial(
        _gatv2_attn_kernel, heads=heads, out_channels=out_channels,
        apply_elu=apply_elu)

    out_t = pl.pallas_call(
        kernel,
        out_shape=jax.ShapeDtypeStruct((hc, n_pad), jnp.float32),
        grid_spec=pltpu.PrefetchScalarGridSpec(
            num_scalar_prefetch=1,                                # blk_nnz
            grid=(nblk, nblk),
            in_specs=[
                pl.BlockSpec(memory_space=pltpu.MemorySpace.SMEM),            # att (scaled)
                pl.BlockSpec((heads, tile), lambda i, j, nnz: (0, i)),        # axr (H, N)
                pl.BlockSpec((tile, heads), lambda i, j, nnz: (j, 0)),        # axl (N, H)
                pl.BlockSpec((heads, out_channels, tile),
                             lambda i, j, nnz: (0, 0, i)),                    # x_r channel-major
                pl.BlockSpec((tile, hc), lambda i, j, nnz: (j, 0)),           # x_l node-major
                pl.BlockSpec((heads, out_channels, tile),
                             lambda i, j, nnz: (0, 0, j)),                    # x_l channel-major
                pl.BlockSpec((tile, tile), lambda i, j, nnz: (j, i)),         # adj^T int8
                pl.BlockSpec((hc, 1), lambda i, j, nnz: (0, 0)),              # bias column
            ],
            out_specs=pl.BlockSpec((hc, tile), lambda i, j, nnz: (0, i)),
            scratch_shapes=[
                pltpu.VMEM((heads, tile), jnp.float32),   # running max
                pltpu.VMEM((heads, tile), jnp.float32),   # running sum-exp
                pltpu.VMEM((hc, tile), jnp.float32),      # running weighted sum
            ],
        ),
        compiler_params=pltpu.CompilerParams(
            dimension_semantics=("parallel", "arbitrary"),
            vmem_limit_bytes=_VMEM_LIMIT,
        ),
    )(blk_nnz, att04, axr, axl, xr_cm, xl, xl_cm, adjt_pad, bias_col)

    return out_t.T                                    # back to (n_pad, hc)


# ----------------------------------------------------------------------------
# NodeGAT parameter init + forward (glue in plain JAX).
# ----------------------------------------------------------------------------
def init_node_gat(key, num_features, num_classes, hidden_channels, num_layers,
                  heads):
    glorot = jax.nn.initializers.glorot_uniform()
    layers = []
    in_dim = num_features
    for li in range(num_layers):
        if li < num_layers - 1:
            h, c = heads, hidden_channels
        else:
            h, c = 1, num_classes                     # last layer: heads=1
        key, k_wl, k_wr, k_att = jax.random.split(key, 4)
        layers.append(dict(
            wl=glorot(k_wl, (in_dim, h * c), jnp.float32),
            bl=jnp.zeros((1, h * c), jnp.float32),
            wr=glorot(k_wr, (in_dim, h * c), jnp.float32),
            br=jnp.zeros((1, h * c), jnp.float32),
            att=glorot(k_att, (h, c), jnp.float32),
            bias=jnp.zeros((1, h * c), jnp.float32),
            heads=h,
            out_channels=c,
        ))
        in_dim = h * c
    return layers


def node_gat_forward(x, adj, layers, *, tile=256, return_node_emb=False):
    n = x.shape[0]
    n128 = _round_up(n, 128)
    t = min(tile, n128)
    # Prefer >=2 target blocks whenever the graph allows it so the "parallel"
    # i axis can shard across both TensorCores on 2-TC parts (v7x).
    if n128 // t < 2 <= n128 // 128:
        t = max(128, (n128 // 2) // 128 * 128)
    n_pad = _round_up(n, t)
    nblk = n_pad // t

    adj01 = (adj > 0)
    x_pad = jnp.zeros((n_pad, x.shape[1]), jnp.float32).at[:n].set(
        x.astype(jnp.float32))
    # Transposed (source-major) adjacency consumed by the attention kernel.
    adjt_pad = jnp.zeros((n_pad, n_pad), jnp.int8).at[:n, :n].set(
        adj01.T.astype(jnp.int8))
    # Per-(target-block, source-block) edge counts -> empty-tile skip table,
    # computed once and reused by every layer.
    cnt = jnp.zeros((n_pad, n_pad), jnp.int32).at[:n, :n].set(
        adj01.astype(jnp.int32))
    blk_nnz = cnt.reshape(nblk, t, nblk, t).sum(axis=(1, 3)).astype(jnp.int32)

    h = x_pad
    for layer in layers[:-1]:
        h = gatv2_layer(h, adjt_pad, blk_nnz, layer, heads=layer["heads"],
                        out_channels=layer["out_channels"], apply_elu=True,
                        tile=t)
        # dropout(p=0.0) is a no-op
    node_emb = h[:n]
    last = layers[-1]
    h = gatv2_layer(h, adjt_pad, blk_nnz, last, heads=last["heads"],
                    out_channels=last["out_channels"], apply_elu=False, tile=t)
    out = h[:n]
    if return_node_emb:
        return out, node_emb
    return out


# ----------------------------------------------------------------------------
# Pure-JAX reference for a GATv2Conv layer (sanity check).
# ----------------------------------------------------------------------------
def ref_gatv2(x, p, adj, heads, out_ch, apply_elu):
    n = x.shape[0]
    xl = (x @ p["wl"] + p["bl"]).reshape(n, heads, out_ch)
    xr = (x @ p["wr"] + p["br"]).reshape(n, heads, out_ch)
    s = xr[:, None] + xl[None, :]                               # (N, N, H, C)
    s = jnp.where(s > 0, s, 0.2 * s)
    e = jnp.einsum("ijhc,hc->ijh", s, p["att"])
    mask = (adj > 0)[:, :, None]
    e = jnp.where(mask, e, -1e30)
    e = e - e.max(axis=1, keepdims=True)
    pr = jnp.where(mask, jnp.exp(e), 0.0)
    alpha = pr / pr.sum(axis=1, keepdims=True)
    out = jnp.einsum("ijh,jhc->ihc", alpha, xl).reshape(n, heads * out_ch)
    out = out + p["bias"]
    if apply_elu:
        out = jnp.where(out > 0, out, jnp.exp(out) - 1.0)
    return out


def ref_forward(x, adj, layers):
    for layer in layers[:-1]:
        x = ref_gatv2(x, layer, adj, layer["heads"], layer["out_channels"], True)
    last = layers[-1]
    return ref_gatv2(x, last, adj, last["heads"], last["out_channels"], False)


if __name__ == "__main__":
    # Small shapes: N=16 nodes, num_features=8, hidden_channels=8, heads=4,
    # num_layers=3, num_classes=4.
    N, NUM_FEATURES, HIDDEN, HEADS, NUM_LAYERS, NUM_CLASSES = 16, 8, 8, 4, 3, 4
    NUM_EDGES = 40

    key = jax.random.PRNGKey(0)
    k_x, k_src, k_dst, k_params = jax.random.split(key, 4)

    x = jax.random.normal(k_x, (N, NUM_FEATURES), dtype=jnp.float32)

    # edge_index[0] = source nodes, edge_index[1] = target nodes (PyG convention).
    src = jax.random.randint(k_src, (NUM_EDGES,), 0, N)
    dst = jax.random.randint(k_dst, (NUM_EDGES,), 0, N)

    # Dense adjacency: adj[target, source] = 1, plus self-loops.
    adj_np = np.zeros((N, N), dtype=np.float32)
    adj_np[np.asarray(dst), np.asarray(src)] = 1.0
    adj_np[np.arange(N), np.arange(N)] = 1.0                    # add_self_loops=True
    adj = jnp.asarray(adj_np)

    layers = init_node_gat(k_params, NUM_FEATURES, NUM_CLASSES, HIDDEN,
                           NUM_LAYERS, HEADS)

    out = jax.block_until_ready(node_gat_forward(x, adj, layers))
    assert out.shape == (N, NUM_CLASSES), out.shape

    expected = jax.block_until_ready(ref_forward(x, adj, layers))
    np.testing.assert_allclose(np.asarray(out), np.asarray(expected),
                               rtol=2e-2, atol=2e-2)

    print("KERNEL_OK")
</pallas_src>

<mosaic_0001>
module attributes {stable_mosaic.version = 11 : i64} {
  func.func @_proj_kernel(%arg0: i32, %arg1: memref<128x8xf32, #tpu.memory_space<vmem>>, %arg2: memref<8x64xf32, #tpu.memory_space<vmem>>, %arg3: memref<1x64xf32, #tpu.memory_space<vmem>>, %arg4: memref<128x64xf32, #tpu.memory_space<vmem>>) attributes {dimension_semantics = [#tpu.dimension_semantics<parallel>], iteration_bounds = array<i64: 1>, scalar_prefetch = 0 : i64, scratch_operands = 0 : i64, tpu.core_type = #tpu.core_type<tc>, window_params = [{transform_indices = @transform_0, window_bounds = array<i64: 128, 8>}, {pipeline_mode = #tpu.pipeline_mode<synchronous>, transform_indices = @transform_1, window_bounds = array<i64: 8, 64>}, {pipeline_mode = #tpu.pipeline_mode<synchronous>, transform_indices = @transform_2, window_bounds = array<i64: 1, 64>}, {transform_indices = @transform_3, window_bounds = array<i64: 128, 64>}]} {
    %c0 = arith.constant 0 : index
    %c0_0 = arith.constant 0 : index
    %0 = vector.load %arg1[%c0, %c0_0] : memref<128x8xf32, #tpu.memory_space<vmem>>, vector<128x8xf32>
    %c0_1 = arith.constant 0 : index
    %c0_2 = arith.constant 0 : index
    %1 = vector.load %arg2[%c0_1, %c0_2] : memref<8x64xf32, #tpu.memory_space<vmem>>, vector<8x64xf32>
    %cst = arith.constant dense<0.000000e+00> : vector<128x64xf32>
    %2 = tpu.matmul %0, %1, %cst {dimension_numbers = #tpu.dot_dimension_numbers<[1], [0], [0], [1], [0, 0, 1, 1], [], []>} : vector<128x8xf32>, vector<8x64xf32>, vector<128x64xf32> -> vector<128x64xf32>
    %c0_3 = arith.constant 0 : index
    %c0_4 = arith.constant 0 : index
    %3 = vector.load %arg3[%c0_3, %c0_4] : memref<1x64xf32, #tpu.memory_space<vmem>>, vector<1x64xf32>
    %4 = vector.broadcast %3 : vector<1x64xf32> to vector<128x64xf32>
    %5 = arith.addf %2, %4 : vector<128x64xf32>
    %c0_5 = arith.constant 0 : index
    %c0_6 = arith.constant 0 : index
    %6 = vector.load %arg4[%c0_5, %c0_6] : memref<128x64xf32, #tpu.memory_space<vmem>>, vector<128x64xf32>
    tpu.vector_store %arg4[%c0_5, %c0_6], %5 {strides = array<i32>} : memref<128x64xf32, #tpu.memory_space<vmem>>, vector<128x64xf32>,
    return
  }
  func.func @transform_0(%arg0: i32) -> (i32, i32) {
    %c0_i32 = arith.constant 0 : i32
    %c0_i32_0 = arith.constant 0 : i32
    return %arg0, %c0_i32 : i32, i32
  }
  func.func @transform_1(%arg0: i32) -> (i32, i32) {
    %c0_i32 = arith.constant 0 : i32
    %c0_i32_0 = arith.constant 0 : i32
    %c0_i32_1 = arith.constant 0 : i32
    return %c0_i32, %c0_i32_0 : i32, i32
  }
  func.func @transform_2(%arg0: i32) -> (i32, i32) {
    %c0_i32 = arith.constant 0 : i32
    %c0_i32_0 = arith.constant 0 : i32
    %c0_i32_1 = arith.constant 0 : i32
    return %c0_i32, %c0_i32_0 : i32, i32
  }
  func.func @transform_3(%arg0: i32) -> (i32, i32) {
    %c0_i32 = arith.constant 0 : i32
    %c0_i32_0 = arith.constant 0 : i32
    return %arg0, %c0_i32 : i32, i32
  }
}

</mosaic_0001>

<bundles_post_ra>
// kernel: tpu_custom_call.1
= control target key start
LH: loop header
LB: loop body
LE: loop exit
PB: predicated region body
PF: predicated region fallthrough
CT: control target
= control target key end

     0   :  { %vm38_vm0 = vcmask 64512   ;;  %vm232_vm1 = vcmask 523264   ;;  %s469_s1 = inlined_call_operand.vmem [shape: f32[8,64], index: 1, kind: input, shape index: {}]   ;;  %s470_s0 = inlined_call_operand.vmem [shape: f32[128,8], index: 0, kind: input, shape index: {}]   ;;  %s471_s2 = inlined_call_operand.vmem [shape: f32[1,64], index: 2, kind: input, shape index: {}]   ;;  %s472_s3 = inlined_call_operand.vmem [shape: f32[128,64], index: 3, kind: output, shape index: {}]  }
   0x1   :  { %v30_v0 = vld [vmem:[%s469_s1] sm:$0xff]  ;;  %v15_v3 = vld [vmem:[%s470_s0 + $0x8] sm:$0xff]  ;;  %v16_v5 = vld [vmem:[%s470_s0 + $0x10] sm:$0xff] }
   0x2   :  { %v14_v1 = vld [vmem:[%s470_s0] sm:$0xff]  ;;  %287 = vmatprep.subr.mxu0 %v30_v0  ;;  %313 = vmatprep.subr.mxu1 %v30_v0  ;;  %v23_v4 = vld [vmem:[%s470_s0 + $0x48] sm:$0xff]  ;;  %v24_v6 = vld [vmem:[%s470_s0 + $0x50] sm:$0xff] }
   0x3   :  { %v22_v2 = vld [vmem:[%s470_s0 + $0x40] sm:$0xff]  ;;  %288 = vmatpush3.msra.mxu0 %v30_v0  ;;  %314 = vmatpush3.msra.mxu1 %v30_v0  ;;  %v17_v7 = vld [vmem:[%s470_s0 + $0x18] sm:$0xff]  ;;  %v19_v11 = vld [vmem:[%s470_s0 + $0x28] sm:$0xff] }
   0x4   :  { %289 = vmatprep.mubr.msk.f32.mxu0 %vm38_vm0, %v14_v1  ;;  %301 = vmatprep.mubr.msk.f32.mxu1 %vm38_vm0, %v22_v2  ;;  %v25_v8 = vld [vmem:[%s470_s0 + $0x58] sm:$0xff]  ;;  %v18_v9 = vld [vmem:[%s470_s0 + $0x20] sm:$0xff]  ;;  %v27_v12 = vld [vmem:[%s470_s0 + $0x68] sm:$0xff] }
   0x5   :  { %290 = vmatmul.mubr.msk.f32.vlgmr.msra.gmra.mrb[0].mxu0 %vm38_vm0, %v15_v3  ;;  %302 = vmatmul.mubr.msk.f32.vlgmr.msra.gmra.mrb[0].mxu1 %vm38_vm0, %v23_v4  ;;  %v26_v10 = vld [vmem:[%s470_s0 + $0x60] sm:$0xff]  ;;  %v20_v13 = vld [vmem:[%s470_s0 + $0x30] sm:$0xff]  ;;  %v21_v15 = vld [vmem:[%s470_s0 + $0x38] sm:$0xff] }
   0x6   :  { %292 = vmatprep.mubr.msk.f32.mxu0 %vm38_vm0, %v16_v5  ;;  %304 = vmatprep.mubr.msk.f32.mxu1 %vm38_vm0, %v24_v6  ;;  %v28_v14 = vld [vmem:[%s470_s0 + $0x70] sm:$0xff]  ;;  %v29_v16 = vld [vmem:[%s470_s0 + $0x78] sm:$0xff]  ;;  %v253_v17 = vld [vmem:[%s471_s2] ss:$0 sm:$0xff] }
   0x9   :  { %293 = vmatmul.mubr.msk.f32.gmra.mrb[2].mxu0 %vm38_vm0, %v17_v7  ;;  %305 = vmatmul.mubr.msk.f32.gmra.mrb[2].mxu1 %vm38_vm0, %v25_v8 }
   0xa   :  { %295 = vmatprep.mubr.msk.f32.mxu0 %vm38_vm0, %v18_v9  ;;  %307 = vmatprep.mubr.msk.f32.mxu1 %vm38_vm0, %v26_v10 }
   0xd   :  { %296 = vmatmul.mubr.msk.f32.gmra.mrb[4].mxu0 %vm38_vm0, %v19_v11  ;;  %308 = vmatmul.mubr.msk.f32.gmra.mrb[4].mxu1 %vm38_vm0, %v27_v12 }
   0xe   :  { %298 = vmatprep.mubr.msk.f32.mxu0 %vm38_vm0, %v20_v13  ;;  %310 = vmatprep.mubr.msk.f32.mxu1 %vm38_vm0, %v28_v14 }
  0x11   :  { %299 = vmatmul.mubr.msk.f32.gmra.mrb[6].mxu0 %vm38_vm0, %v21_v15  ;;  %311 = vmatmul.mubr.msk.f32.gmra.mrb[6].mxu1 %vm38_vm0, %v29_v16 }
  0xd8   :  { %v291_v18 = vpop.f32.mrb[0].mxu0  ;;  %v303_v19 = vpop.f32.mrb[0].mxu1 }
  0xd9   :  { %v159_v20 = vadd.f32 %v291_v18, %v253_v17  ;;  %v199_v21 = vadd.f32 %v303_v19, %v253_v17  ;;  %v153_v22 = vpop.f32.mrb[1].mxu0  ;;  %v193_v23 = vpop.f32.mrb[1].mxu1 }
  0xda   :  { %v154_v24 = vadd.f32 %v253_v17, %v153_v22  ;;  %v194_v25 = vadd.f32 %v253_v17, %v193_v23 }
  0xdb   :  { %234 = vst.msk [vmem:[%s472_s3 + $0x8] sm:$0xff] %vm232_vm1, %v159_v20  ;;  %242 = vst.msk [vmem:[%s472_s3 + $0x48] sm:$0xff] %vm232_vm1, %v199_v21 }
  0xdc   :  { %233 = vst.msk [vmem:[%s472_s3] sm:$0xff] %vm232_vm1, %v154_v24  ;;  %241 = vst.msk [vmem:[%s472_s3 + $0x40] sm:$0xff] %vm232_vm1, %v194_v25  ;;  %v294_v26 = vpop.f32.mrb[2].mxu0  ;;  %v306_v27 = vpop.f32.mrb[2].mxu1 }
  0xdd   :  { %v169_v28 = vadd.f32 %v294_v26, %v253_v17  ;;  %v209_v29 = vadd.f32 %v306_v27, %v253_v17  ;;  %v163_v30 = vpop.f32.mrb[3].mxu0  ;;  %v203_v31 = vpop.f32.mrb[3].mxu1 }
  0xde   :  { %v164_v32 = vadd.f32 %v253_v17, %v163_v30  ;;  %v204_v33 = vadd.f32 %v253_v17, %v203_v31 }
  0xdf   :  { %236 = vst.msk [vmem:[%s472_s3 + $0x18] sm:$0xff] %vm232_vm1, %v169_v28  ;;  %244 = vst.msk [vmem:[%s472_s3 + $0x58] sm:$0xff] %vm232_vm1, %v209_v29 }
  0xe0   :  { %235 = vst.msk [vmem:[%s472_s3 + $0x10] sm:$0xff] %vm232_vm1, %v164_v32  ;;  %243 = vst.msk [vmem:[%s472_s3 + $0x50] sm:$0xff] %vm232_vm1, %v204_v33  ;;  %v297_v34 = vpop.f32.mrb[4].mxu0  ;;  %v309_v35 = vpop.f32.mrb[4].mxu1 }
  0xe1   :  { %v179_v36 = vadd.f32 %v297_v34, %v253_v17  ;;  %v219_v37 = vadd.f32 %v309_v35, %v253_v17  ;;  %v173_v38 = vpop.f32.mrb[5].mxu0  ;;  %v213_v39 = vpop.f32.mrb[5].mxu1 }
  0xe2   :  { %v174_v40 = vadd.f32 %v253_v17, %v173_v38  ;;  %v214_v41 = vadd.f32 %v253_v17, %v213_v39 }
  0xe3   :  { %238 = vst.msk [vmem:[%s472_s3 + $0x28] sm:$0xff] %vm232_vm1, %v179_v36  ;;  %246 = vst.msk [vmem:[%s472_s3 + $0x68] sm:$0xff] %vm232_vm1, %v219_v37 }
  0xe4   :  { %237 = vst.msk [vmem:[%s472_s3 + $0x20] sm:$0xff] %vm232_vm1, %v174_v40  ;;  %245 = vst.msk [vmem:[%s472_s3 + $0x60] sm:$0xff] %vm232_vm1, %v214_v41  ;;  %v300_v42 = vpop.f32.mrb[6].mxu0  ;;  %v312_v43 = vpop.f32.mrb[6].mxu1 }
  0xe5   :  { %v189_v44 = vadd.f32 %v300_v42, %v253_v17  ;;  %v229_v45 = vadd.f32 %v312_v43, %v253_v17  ;;  %v183_v46 = vpop.f32.mrb[7].mxu0  ;;  %v223_v47 = vpop.f32.mrb[7].mxu1 }
  0xe6   :  { %v184_v48 = vadd.f32 %v253_v17, %v183_v46  ;;  %v224_v49 = vadd.f32 %v253_v17, %v223_v47 }
  0xe7   :  { %240 = vst.msk [vmem:[%s472_s3 + $0x38] sm:$0xff] %vm232_vm1, %v189_v44  ;;  %248 = vst.msk [vmem:[%s472_s3 + $0x78] sm:$0xff] %vm232_vm1, %v229_v45 }
  0xe8   :  { %239 = vst.msk [vmem:[%s472_s3 + $0x30] sm:$0xff] %vm232_vm1, %v184_v48  ;;  %247 = vst.msk [vmem:[%s472_s3 + $0x70] sm:$0xff] %vm232_vm1, %v224_v49 }

</bundles_post_ra>
